<compile_context>
chip_gen: v5e
topology: v5e:2x2
jax: 0.10.0
libtpu: 0.0.40
codegen_flags: <defaults>
</compile_context>

<pallas_src>
import functools

import jax
import jax.numpy as jnp
from jax import lax
from jax.experimental import pallas as pl
from jax.experimental.pallas import tpu as pltpu

_BN_EPS = 1e-5
_HIGH = lax.Precision.HIGHEST


def _rup8(v):
    return (v + 7) // 8 * 8


# ---------------------------------------------------------------------------
# pltpu.roll direction probe (run once, on device).
# ---------------------------------------------------------------------------
def _roll_probe_kernel(x_ref, o_ref):
    o_ref[...] = pltpu.roll(x_ref[...], 1, 1)


_ROLL_NUMPY_LIKE = None


def _roll_is_numpy_like():
    """True iff pltpu.roll matches jnp.roll semantics (out[i] = in[i - shift])."""
    global _ROLL_NUMPY_LIKE
    if _ROLL_NUMPY_LIKE is None:
        probe = jnp.arange(8 * 256, dtype=jnp.float32).reshape(8, 256)
        rolled = pl.pallas_call(
            _roll_probe_kernel,
            out_shape=jax.ShapeDtypeStruct((8, 256), jnp.float32))(probe)
        _ROLL_NUMPY_LIKE = bool(rolled[0, 1] == probe[0, 0])
    return _ROLL_NUMPY_LIKE


# ---------------------------------------------------------------------------
# Pallas kernel: whole FPAModule1 forward for one image per grid step.
# ---------------------------------------------------------------------------
def _fpa_kernel(x_ref, wgb_ref, d1_ref, k1_ref, pb_ref, pc_ref,
                k2k4_ref, k3_ref, k5_ref, ups_ref, bias_ref, o_ref,
                *, roll_shifts):
    f32 = jnp.float32
    x_img = x_ref[0]                                   # [Cin, HW] lane-dense
    cin = x_img.shape[0]
    s1s1 = d1_ref.shape[1]
    s2s2 = pb_ref.shape[2]
    s3s3 = pc_ref.shape[2]

    def mm(a, b, prec=None):
        return jnp.dot(a, b, preferred_element_type=f32, precision=prec)

    def pool_small(v, p_ref):                          # 2x2/2 maxpool on tiny maps
        t = mm(v, p_ref[0])
        t = jnp.maximum(t, mm(v, p_ref[1]))
        t = jnp.maximum(t, mm(v, p_ref[2]))
        return jnp.maximum(t, mm(v, p_ref[3]))

    # -- packed 1x1 conv weights: [Cout, 2*Cin+2] = [w_mid | w_gp | b_mid | b_gp]
    wgb = wgb_ref[...]
    w_mid = wgb[:, :cin]
    w_gp = wgb[:, cin:2 * cin]
    b_mid = wgb[:, 2 * cin:2 * cin + 1]
    b_gp = wgb[:, 2 * cin + 1:2 * cin + 2]

    # -- mid: 1x1 conv (+folded BN) + ReLU ----------------------------------
    mid = jnp.maximum(mm(w_mid, x_img, _HIGH) + b_mid, 0.0)        # [Cout, HW]

    # -- branch1: global avg pool -> 1x1 conv + ReLU (1x1 upsample == bcast)
    gap = jnp.mean(x_img, axis=1, keepdims=True)                   # [Cin, 1]
    b1 = jnp.maximum(mm(w_gp, gap, _HIGH) + b_gp, 0.0)             # [Cout, 1]

    # -- pool1 (full resolution): two lane-rolls + maxes (no MXU), then one
    #    0/1 anchor-select matmul.  Window max is anchored at the bottom-right
    #    pixel of every 2x2 block; wrapped lanes are never selected.
    m = jnp.maximum(x_img, pltpu.roll(x_img, roll_shifts[0], 1))   # horizontal
    m = jnp.maximum(m, pltpu.roll(m, roll_shifts[1], 1))           # + vertical
    pooled = mm(m, d1_ref[...])                                    # [Cin, s1^2]

    # -- down1: 7x7 conv (Cin->1) as Cin independent operator matmuls + tree add
    terms = [mm(pooled[c:c + 1, :], k1_ref[c], _HIGH) for c in range(cin)]
    while len(terms) > 1:
        nxt = [terms[i] + terms[i + 1] for i in range(0, len(terms) - 1, 2)]
        if len(terms) % 2:
            nxt.append(terms[-1])
        terms = nxt
    x1 = jnp.maximum(terms[0] + bias_ref[0], 0.0)                  # [1, s1^2]

    # -- down2: maxpool + 5x5 conv + ReLU ------------------------------------
    x2 = jnp.maximum(mm(pool_small(x1, pb_ref), k2k4_ref[0], _HIGH)
                     + bias_ref[1], 0.0)                           # [1, s2^2]

    # -- down3: maxpool + two 3x3 convs + ReLU -------------------------------
    x3 = pool_small(x2, pc_ref)                                    # [1, s3^2]
    x3 = jnp.maximum(mm(x3, k3_ref[0], _HIGH) + bias_ref[2], 0.0)
    x3 = jnp.maximum(mm(x3, k3_ref[1], _HIGH) + bias_ref[3], 0.0)

    # -- conv2 / conv1 (independent of x3) -----------------------------------
    x2c = jnp.maximum(mm(x2, k2k4_ref[1], _HIGH) + bias_ref[4], 0.0)
    x1c = jnp.maximum(mm(x1, k5_ref[...], _HIGH) + bias_ref[5], 0.0)

    # -- merge: pre-composed upsample operators -> 3 independent matmuls ----
    off2 = _rup8(s3s3)
    off1 = off2 + _rup8(s2s2)
    xm = (mm(x3, ups_ref[0:s3s3, :])
          + mm(x2c, ups_ref[off2:off2 + s2s2, :])
          + mm(x1c, ups_ref[off1:off1 + s1s1, :]))                 # [1, HW]

    # -- final combine, lane-dense [Cout, HW] store --------------------------
    o_ref[0] = (xm * mid + b1).astype(o_ref.dtype)


# ---------------------------------------------------------------------------
# Wrapper-side operator construction (plain JAX glue, runs once per call).
# ---------------------------------------------------------------------------
def _fold_bn(p):
    """Fold eval-mode BatchNorm (running stats) into conv weight/bias."""
    scale = p["gamma"] / jnp.sqrt(p["var"] + _BN_EPS)
    w = p["w"] * scale[:, None, None, None]
    b = (p["b"] - p["mean"]) * scale + p["beta"]
    return w, b


def _conv_same_op(w, size, pad):
    """Dense operator T [Cin*S*S, S*S] with out_flat = in_flat @ T for a
    stride-1 zero-padded ('same') KxK conv with one output channel."""
    cin, k, _ = w.shape
    d = jnp.arange(size)[:, None] - jnp.arange(size)[None, :] + pad      # d[i, o]
    valid = (d >= 0) & (d < k)
    dc = jnp.clip(d, 0, k - 1)
    t = w[:, dc[:, None, :, None], dc[None, :, None, :]]                 # [Cin,S,S,S,S]
    t = t * (valid[:, None, :, None] & valid[None, :, None, :])
    return t.reshape(cin * size * size, size * size).astype(jnp.float32)


def _pool_select_ops(size):
    """Four 0/1 matrices [S*S, (S/2)^2]; elementwise max of the four
    right-matmuls == 2x2 stride-2 maxpool of a row-major flattened map."""
    so = size // 2
    i_in = jnp.arange(size)
    i_out = jnp.arange(so)
    mats = []
    for dh in (0, 1):
        for dw in (0, 1):
            rows = (i_in[:, None] == 2 * i_out[None, :] + dh).astype(jnp.float32)
            cols = (i_in[:, None] == 2 * i_out[None, :] + dw).astype(jnp.float32)
            mats.append(jnp.einsum("hi,wj->hwij", rows, cols)
                        .reshape(size * size, so * so))
    return jnp.stack(mats)


def _pool_downsample_op(size):
    """0/1 matrix [S*S, (S/2)^2] selecting the bottom-right anchor of every
    2x2 block from the roll-maxed full-resolution map."""
    so = size // 2
    q = jnp.arange(so * so)
    r, c = q // so, q % so
    anchor = (2 * r + 1) * size + (2 * c + 1)
    p = jnp.arange(size * size)
    return (p[:, None] == anchor[None, :]).astype(jnp.float32)


def _upsample_op(s_in, s_out):
    """Transposed bilinear (align_corners=True) operator [s_in^2, s_out^2]."""
    if s_in == 1:
        return jnp.ones((1, s_out * s_out), jnp.float32)
    pos = jnp.arange(s_out) * ((s_in - 1) / (s_out - 1))
    i0 = jnp.clip(jnp.floor(pos).astype(jnp.int32), 0, s_in - 2)
    frac = (pos - i0).astype(jnp.float32)
    k = jnp.arange(s_in)
    u = ((k[None, :] == i0[:, None]) * (1.0 - frac)[:, None]
         + (k[None, :] == i0[:, None] + 1) * frac[:, None])              # [s_out, s_in]
    t = jnp.einsum("ih,jw->ijhw", u, u).reshape(s_out * s_out, s_in * s_in)
    return t.T.astype(jnp.float32)


@functools.partial(jax.jit, static_argnums=(2,))
def _fpa_forward(x, params, roll_numpy_like):
    n, cin, h, w = x.shape
    assert h == w and h % 8 == 0 and h >= 8, "kernel assumes square input, spatial % 8 == 0"
    cout = params["mid"]["w"].shape[0]
    hw = h * w
    s1, s2, s3 = h // 2, h // 4, h // 8

    w_mid, b_mid = _fold_bn(params["mid"])
    w_gp, b_gp = _fold_bn(params["branch1"])
    w_d1, b_d1 = _fold_bn(params["down1"])
    w_d2, b_d2 = _fold_bn(params["down2"])
    w_d3a, b_d3a = _fold_bn(params["down3a"])
    w_d3b, b_d3b = _fold_bn(params["down3b"])
    w_c2, b_c2 = _fold_bn(params["conv2"])
    w_c1, b_c1 = _fold_bn(params["conv1"])

    # 1x1 convs packed into a single [Cout, 2*Cin+2] constant.
    wgb = jnp.concatenate(
        [w_mid[:, :, 0, 0], w_gp[:, :, 0, 0], b_mid[:, None], b_gp[:, None]],
        axis=1).astype(jnp.float32)

    d1 = _pool_downsample_op(h)                                      # [hw, s1^2]
    k1 = _conv_same_op(w_d1[0], s1, 3).reshape(cin, s1 * s1, s1 * s1)
    pb = _pool_select_ops(s1)                                        # (4, s1^2, s2^2)
    pc = _pool_select_ops(s2)                                        # (4, s2^2, s3^2)
    k2k4 = jnp.stack([_conv_same_op(w_d2[0], s2, 2),                 # down2 5x5
                      _conv_same_op(w_c2[0], s2, 2)])                # conv2 5x5
    k3 = jnp.stack([_conv_same_op(w_d3a[0], s3, 1),                  # down3 3x3 x2
                    _conv_same_op(w_d3b[0], s3, 1)])
    k5 = _conv_same_op(w_c1[0], s1, 3)                               # conv1 7x7

    # Pre-composed (exact f32) bilinear upsample operators, one padded slab.
    u1 = _upsample_op(s1, h)                                         # [s1^2, hw]
    u2 = jnp.dot(_upsample_op(s2, s1), u1, precision=_HIGH)          # [s2^2, hw]
    u3 = jnp.dot(_upsample_op(s3, s2), u2, precision=_HIGH)          # [s3^2, hw]
    off2 = _rup8(s3 * s3)
    off1 = off2 + _rup8(s2 * s2)
    ups = jnp.zeros((off1 + s1 * s1, hw), jnp.float32)
    ups = ups.at[:s3 * s3].set(u3)
    ups = ups.at[off2:off2 + s2 * s2].set(u2)
    ups = ups.at[off1:].set(u1)

    bias = jnp.stack([b_d1[0], b_d2[0], b_d3a[0], b_d3b[0], b_c2[0], b_c1[0]])

    # Static lane-roll shifts: we need "value at p-k lands at p" for k in (1, W).
    roll_shifts = tuple(k if roll_numpy_like else (hw - k) % hw for k in (1, w))
    kernel = functools.partial(_fpa_kernel, roll_shifts=roll_shifts)

    def const(shape):
        nd = len(shape)
        return pl.BlockSpec(shape, lambda i, _nd=nd: (0,) * _nd)

    in_specs = [
        pl.BlockSpec((1, cin, hw), lambda i: (i, 0, 0)),             # x
        const(wgb.shape),                                            # mid/gp w+b
        const(d1.shape),                                             # pool1 anchor select
        const(k1.shape),                                             # down1 op (per channel)
        const(pb.shape), const(pc.shape),                            # small pools
        const(k2k4.shape), const(k3.shape), const(k5.shape),         # conv ops
        const(ups.shape),                                            # upsample slab
        pl.BlockSpec(memory_space=pltpu.MemorySpace.SMEM),           # scalar biases
    ]

    out = pl.pallas_call(
        kernel,
        out_shape=jax.ShapeDtypeStruct((n, cout, hw), jnp.float32),
        grid=(n,),
        in_specs=in_specs,
        out_specs=pl.BlockSpec((1, cout, hw), lambda i: (i, 0, 0)),
        compiler_params=pltpu.CompilerParams(dimension_semantics=("parallel",)),
    )(x.reshape(n, cin, hw), wgb, d1, k1, pb, pc, k2k4, k3, k5, ups, bias)
    return out.reshape(n, cout, h, w)


def fpa_module1(x, params):
    """FPAModule1 forward (BatchNorm folded, eval mode). x: (N, Cin, H, W)."""
    return _fpa_forward(x, params, _roll_is_numpy_like())


# ---------------------------------------------------------------------------
# Pure-JAX reference (independent code path: XLA conv / reduce_window / gather)
# ---------------------------------------------------------------------------
def _ref_conv_bn_relu(x, p, pad):
    y = lax.conv_general_dilated(
        x, p["w"], window_strides=(1, 1), padding=[(pad, pad), (pad, pad)],
        dimension_numbers=("NCHW", "OIHW", "NCHW"))
    y = y + p["b"][None, :, None, None]
    y = (y - p["mean"][None, :, None, None]) / jnp.sqrt(p["var"][None, :, None, None] + _BN_EPS)
    y = y * p["gamma"][None, :, None, None] + p["beta"][None, :, None, None]
    return jnp.maximum(y, 0.0)


def _ref_maxpool2(x):
    return lax.reduce_window(x, -jnp.inf, lax.max, (1, 1, 2, 2), (1, 1, 2, 2), "VALID")


def _ref_upsample(x, out_h, out_w):
    n, c, h, w = x.shape

    def coords(s_in, s_out):
        if s_in == 1:
            z = jnp.zeros((s_out,), jnp.int32)
            return z, z, jnp.zeros((s_out,), jnp.float32)
        pos = jnp.arange(s_out) * ((s_in - 1) / (s_out - 1))
        i0 = jnp.clip(jnp.floor(pos).astype(jnp.int32), 0, s_in - 2)
        return i0, i0 + 1, (pos - i0).astype(jnp.float32)

    r0, r1, rf = coords(h, out_h)
    c0, c1, cf = coords(w, out_w)
    xr = (x[:, :, r0, :] * (1 - rf)[None, None, :, None]
          + x[:, :, r1, :] * rf[None, None, :, None])
    return (xr[:, :, :, c0] * (1 - cf)[None, None, None, :]
            + xr[:, :, :, c1] * cf[None, None, None, :])


def fpa_module1_reference(x, params):
    n, cin, h, w = x.shape
    b1 = jnp.mean(x, axis=(2, 3), keepdims=True)
    b1 = _ref_conv_bn_relu(b1, params["branch1"], 0)
    b1 = _ref_upsample(b1, h, w)
    mid = _ref_conv_bn_relu(x, params["mid"], 0)
    x1 = _ref_conv_bn_relu(_ref_maxpool2(x), params["down1"], 3)
    x2 = _ref_conv_bn_relu(_ref_maxpool2(x1), params["down2"], 2)
    x3 = _ref_conv_bn_relu(_ref_maxpool2(x2), params["down3a"], 1)
    x3 = _ref_conv_bn_relu(x3, params["down3b"], 1)
    x3 = _ref_upsample(x3, h // 4, w // 4)
    x2 = _ref_conv_bn_relu(x2, params["conv2"], 2)
    xm = _ref_upsample(x2 + x3, h // 2, w // 2)
    x1 = _ref_conv_bn_relu(x1, params["conv1"], 3)
    xm = _ref_upsample(xm + x1, h, w)
    return xm * mid + b1


# ---------------------------------------------------------------------------
def _make_conv_bn_params(key, cin, cout, ksize):
    kw, kb, kg, kbe, km, kv = jax.random.split(key, 6)
    bound = 1.0 / float(cin * ksize * ksize) ** 0.5
    return dict(
        w=jax.random.uniform(kw, (cout, cin, ksize, ksize), jnp.float32, -bound, bound),
        b=jax.random.uniform(kb, (cout,), jnp.float32, -bound, bound),
        gamma=jax.random.uniform(kg, (cout,), jnp.float32, 0.5, 1.5),
        beta=0.1 * jax.random.normal(kbe, (cout,), jnp.float32),
        mean=0.1 * jax.random.normal(km, (cout,), jnp.float32),
        var=jax.random.uniform(kv, (cout,), jnp.float32, 0.5, 1.5),
    )


if __name__ == "__main__":
    N, CIN, H, W = 2, 4, 16, 16
    COUT = 8

    root = jax.random.PRNGKey(0)
    kx, *pkeys = jax.random.split(root, 10)
    x = jax.random.normal(kx, (N, CIN, H, W), jnp.float32)
    params = {
        "branch1": _make_conv_bn_params(pkeys[0], CIN, COUT, 1),
        "mid": _make_conv_bn_params(pkeys[1], CIN, COUT, 1),
        "down1": _make_conv_bn_params(pkeys[2], CIN, 1, 7),
        "down2": _make_conv_bn_params(pkeys[3], 1, 1, 5),
        "down3a": _make_conv_bn_params(pkeys[4], 1, 1, 3),
        "down3b": _make_conv_bn_params(pkeys[5], 1, 1, 3),
        "conv2": _make_conv_bn_params(pkeys[6], 1, 1, 5),
        "conv1": _make_conv_bn_params(pkeys[7], 1, 1, 7),
    }

    out = jax.block_until_ready(fpa_module1(x, params))
    ref = fpa_module1_reference(x, params)

    assert out.shape == (N, COUT, H, W), out.shape
    max_err = float(jnp.max(jnp.abs(out - ref)))
    assert jnp.allclose(out, ref, atol=3e-2, rtol=3e-2), f"max abs err = {max_err}"
    print("KERNEL_OK")
</pallas_src>

<mosaic_0001>
module attributes {stable_mosaic.version = 11 : i64} {
  func.func @_roll_probe_kernel(%arg0: memref<8x256xf32, #tpu.memory_space<vmem>>, %arg1: memref<8x256xf32, #tpu.memory_space<vmem>>) attributes {dimension_semantics = [], scalar_prefetch = 0 : i64, scratch_operands = 0 : i64, tpu.core_type = #tpu.core_type<tc>} {
    %c0 = arith.constant 0 : index
    %c0_0 = arith.constant 0 : index
    %0 = vector.load %arg0[%c0, %c0_0] : memref<8x256xf32, #tpu.memory_space<vmem>>, vector<8x256xf32>
    %c1_i32 = arith.constant 1 : i32
    %1 = tpu.dynamic_rotate %0 by %c1_i32 dim 1 : vector<8x256xf32>, i32 -> vector<8x256xf32>
    %c0_1 = arith.constant 0 : index
    %c0_2 = arith.constant 0 : index
    %2 = vector.load %arg1[%c0_1, %c0_2] : memref<8x256xf32, #tpu.memory_space<vmem>>, vector<8x256xf32>
    tpu.vector_store %arg1[%c0_1, %c0_2], %1 {strides = array<i32>} : memref<8x256xf32, #tpu.memory_space<vmem>>, vector<8x256xf32>,
    return
  }
}

</mosaic_0001>

<bundles_post_ra>
// kernel: tpu_custom_call.1
= control target key start
LH: loop header
LB: loop body
LE: loop exit
PB: predicated region body
PF: predicated region fallthrough
CT: control target
= control target key end

     0   :  { %6 = vsyncpa [#allocation3], 0  ;;  %s127_s0 = inlined_call_operand.hbm [shape: f32[8,256], index: 0, kind: input, shape index: {}]   ;;  %s128_s1 = inlined_call_operand.hbm [shape: f32[8,256], index: 1, kind: output, shape index: {}]  }
   0x1   :  { %7 = vsyncpa [#allocation4], 0  ;;  %s13_s8 = sshll.u32 %s127_s0, 4  ;;  %s108_s9 = smov [#allocation2]   ;;  %s14_s8 = int_to_ptr.hbm [resolvable:$true] %s13_s8 }
   0x2   :  { %s15_s10 = sshll.u32 %s108_s9, 4  ;;  %s16_s10 = int_to_ptr.vmem [resolvable:$true] %s15_s10 }
   0x3   :  { %18 = dma.hbm_to_vmem [thread:$0]  %s14_s8, 256, %s16_s10, [#allocation3]  }
   0x4   :  { %104 = dma.done.wait [#allocation3], 256  }
   0x5   :  { %105 = vsyncadd [#allocation3], 4294967040  ;;  %v23_v0 = vld [vmem:[#allocation2] sm:$0xff]  ;;  %s109_s11 = smov 1   ;;  %v24_v1 = vld [vmem:[#allocation2 + $0x8] sm:$0xff]  ;;  %v29_v2 = vlaneseq  ;;  %s110_s12 = smov [#allocation5]  }
   0x6   :  { %25 = vrot.lane.b32.xlu0 %v23_v0, %s109_s11  ;;  %s41_s13 = sshll.u32 %s110_s12, 4  ;;  %s43_s15 = sshll.u32 %s128_s1, 4  ;;  %s42_s13 = int_to_ptr.vmem [resolvable:$true] %s41_s13  ;;  %s44_s15 = int_to_ptr.hbm [resolvable:$true] %s43_s15 }
   0x7   :  { %v30_v4 = vand.u32 127, %v29_v2 }
   0x9   :  { %vm31_vm0 = vcmp.lt.s32.totalorder %v30_v4, 1 }
   0xe   :  { %27 = vrot.lane.b32.xlu0 %v24_v1, %s109_s11 }
  0x78   :  { %v26_v3 = vpop.permute.xlu0 %25 }
  0x80   :  { %v28_v5 = vpop.permute.xlu0 %27 }
  0x81   :  { %v32_v6 = vsel %vm31_vm0, %v26_v3, %v28_v5  ;;  %v33_v7 = vsel %vm31_vm0, %v28_v5, %v26_v3 }
  0x82   :  { %34 = vst [vmem:[#allocation5] sm:$0xff] %v33_v7 }
  0x83   :  { %35 = vst [vmem:[#allocation5 + $0x8] sm:$0xff] %v32_v6 }
  0x84   :  { %46 = dma.vmem_to_hbm [thread:$0]  %s42_s13, 256, %s44_s15, [#allocation4]  }
  0x85   :  { %106 = dma.done.wait [#allocation4], 256  }
  0x86   :  { %107 = vsyncadd [#allocation4], 4294967040 }
  0x87   :  { %51 = vsyncpa [#allocation3], 1 }
  0x88   :  { %52 = vsyncpa [#allocation4], 1 }

</bundles_post_ra>
